<compile_context>
chip_gen: v6e
topology: v6e:2x2x1
jax: 0.10.0
libtpu: 0.0.40
codegen_flags: <defaults>
</compile_context>

<pallas_src>
import numpy as np

import jax
import jax.numpy as jnp
from jax.experimental import pallas as pl
from jax.experimental.pallas import tpu as pltpu


def _kernel(x0_ref, x1_ref, w_ref, out0_ref, out1_ref):
    """Single fused matmul: [out0; out1] = W @ [x0; x1; ones]."""
    k0 = x0_ref.shape[0]                    # N*C rows from x0
    k1 = x1_ref.shape[0]                    # N*C rows from x1
    kb = w_ref.shape[1] - k0 - k1           # 8-row ones block (bias fold)
    hw = x0_ref.shape[1]

    rhs = jnp.concatenate(
        [x0_ref[...], x1_ref[...], jnp.ones((kb, hw), jnp.float32)], axis=0)

    y = jnp.dot(w_ref[...], rhs, preferred_element_type=jnp.float32)

    nco = out0_ref.shape[0]                 # sublane-aligned split (0 and 8)
    out0_ref[...] = y[:nco].astype(out0_ref.dtype)
    out1_ref[...] = y[nco:].astype(out1_ref.dtype)


def pack_params(n, w00, b00, w01, b01, w10, b10, bias_pad=8):
    """Init-time (numpy) packing of all conv params into one (2*N*Co, 2*N*C+8).

    Column layout:  [ kron(I_N, w_on_x0) | kron(I_N, w_on_x1) | bias | zeros ]
    Row layout:     rows 0:N*Co -> out0,  rows N*Co:2*N*Co -> out1.
    The "None" submodule is a zero block; summed biases for out0 = b00 + b01.
    """
    w00, b00, w01, b01, w10, b10 = (
        np.asarray(a, np.float32) for a in (w00, b00, w01, b01, w10, b10))
    c_out, c = w00.shape
    nco, nc = n * c_out, n * c
    eye = np.eye(n, dtype=np.float32)

    def bd(w):                               # block-diagonal over the batch
        return np.kron(eye, w)               # (nco, nc)

    def bias_block(b):                       # bias in column 0, rest zeros
        blk = np.zeros((nco, bias_pad), np.float32)
        blk[:, 0] = np.tile(b, n)
        return blk

    top = np.concatenate([bd(w00), bd(w01), bias_block(b00 + b01)], axis=1)
    bot = np.concatenate([bd(w10), np.zeros((nco, nc), np.float32),
                          bias_block(b10)], axis=1)
    return jnp.asarray(np.concatenate([top, bot], axis=0))  # (2*nco, 2*nc+8)


def _multiple_input_output_impl(x0, x1, params):
    n, c, h, w = x0.shape
    hw = h * w
    nc = n * c
    two_nco = params.shape[0]
    nco = two_nco // 2
    c_out = nco // n

    # Free row-major reshapes: NCHW -> (N*C, H*W).
    x0f = x0.reshape(nc, hw)
    x1f = x1.reshape(nc, hw)

    flops = 2 * two_nco * params.shape[1] * hw
    bytes_accessed = 4 * (2 * nc * hw + params.size + two_nco * hw)

    out0f, out1f = pl.pallas_call(
        _kernel,
        out_shape=(jax.ShapeDtypeStruct((nco, hw), jnp.float32),
                   jax.ShapeDtypeStruct((nco, hw), jnp.float32)),
        in_specs=[pl.BlockSpec(memory_space=pltpu.MemorySpace.VMEM)] * 3,
        out_specs=(pl.BlockSpec(memory_space=pltpu.MemorySpace.VMEM),
                   pl.BlockSpec(memory_space=pltpu.MemorySpace.VMEM)),
        cost_estimate=pl.CostEstimate(flops=flops, transcendentals=0,
                                      bytes_accessed=bytes_accessed),
    )(x0f, x1f, params)

    # Free reshapes back to NCHW (no slicing — the kernel emits both outputs).
    return [out0f.reshape(n, c_out, h, w), out1f.reshape(n, c_out, h, w)]


multiple_input_output = jax.jit(_multiple_input_output_impl)


def _reference(x0, x1, w00, b00, w01, b01, w10, b10):
    def conv1x1(x, w, b):
        return jnp.einsum('oc,nchw->nohw', w, x) + b[None, :, None, None]

    out0 = conv1x1(x0, w00, b00) + conv1x1(x1, w01, b01)
    out1 = conv1x1(x0, w10, b10)
    return [out0, out1]


if __name__ == "__main__":
    key = jax.random.PRNGKey(0)
    ks = jax.random.split(key, 8)
    N, C, H, W = 2, 4, 16, 16
    C_out = 4

    x0 = jax.random.normal(ks[0], (N, C, H, W), dtype=jnp.float32)
    x1 = jax.random.normal(ks[1], (N, C, H, W), dtype=jnp.float32)

    # deterministic synthetic 1x1-conv parameters
    w00 = jax.random.normal(ks[2], (C_out, C), dtype=jnp.float32) * 0.1
    b00 = jax.random.normal(ks[3], (C_out,), dtype=jnp.float32) * 0.1
    w01 = jax.random.normal(ks[4], (C_out, C), dtype=jnp.float32) * 0.1
    b01 = jax.random.normal(ks[5], (C_out,), dtype=jnp.float32) * 0.1
    w10 = jax.random.normal(ks[6], (C_out, C), dtype=jnp.float32) * 0.1
    b10 = jax.random.normal(ks[7], (C_out,), dtype=jnp.float32) * 0.1

    # Hoisted, init-time parameter packing (done once, not per call).
    params = pack_params(N, w00, b00, w01, b01, w10, b10)

    outs = multiple_input_output(x0, x1, params)
    outs = [jax.block_until_ready(o) for o in outs]

    refs = _reference(x0, x1, w00, b00, w01, b01, w10, b10)
    for o, r in zip(outs, refs):
        assert o.shape == r.shape
        assert jnp.allclose(o, r, atol=1e-5, rtol=1e-5)

    print("KERNEL_OK")
</pallas_src>

<mosaic_0001>
module attributes {stable_mosaic.version = 11 : i64} {
  func.func @_kernel(%arg0: memref<8x256xf32, #tpu.memory_space<vmem>>, %arg1: memref<8x256xf32, #tpu.memory_space<vmem>>, %arg2: memref<16x24xf32, #tpu.memory_space<vmem>>, %arg3: memref<8x256xf32, #tpu.memory_space<vmem>>, %arg4: memref<8x256xf32, #tpu.memory_space<vmem>>) attributes {dimension_semantics = [], scalar_prefetch = 0 : i64, scratch_operands = 0 : i64, tpu.core_type = #tpu.core_type<tc>} {
    %c0 = arith.constant 0 : index
    %c0_0 = arith.constant 0 : index
    %0 = vector.load %arg0[%c0, %c0_0] : memref<8x256xf32, #tpu.memory_space<vmem>>, vector<8x256xf32>
    %c0_1 = arith.constant 0 : index
    %c0_2 = arith.constant 0 : index
    %1 = vector.load %arg1[%c0_1, %c0_2] : memref<8x256xf32, #tpu.memory_space<vmem>>, vector<8x256xf32>
    %cst = arith.constant 1.000000e+00 : f32
    %2 = vector.broadcast %cst : f32 to vector<8x256xf32>
    %3 = tpu.concatenate %0, %1, %2 in 0 : vector<8x256xf32>, vector<8x256xf32>, vector<8x256xf32> -> vector<24x256xf32>
    %c0_3 = arith.constant 0 : index
    %c0_4 = arith.constant 0 : index
    %4 = vector.load %arg2[%c0_3, %c0_4] : memref<16x24xf32, #tpu.memory_space<vmem>>, vector<16x24xf32>
    %cst_5 = arith.constant dense<0.000000e+00> : vector<16x256xf32>
    %5 = tpu.matmul %4, %3, %cst_5 {dimension_numbers = #tpu.dot_dimension_numbers<[1], [0], [0], [1], [0, 0, 1, 1], [], []>} : vector<16x24xf32>, vector<24x256xf32>, vector<16x256xf32> -> vector<16x256xf32>
    %6 = vector.extract_strided_slice %5 {offsets = [0, 0], sizes = [8, 256], strides = [1, 1]} : vector<16x256xf32> to vector<8x256xf32>
    %c0_6 = arith.constant 0 : index
    %c0_7 = arith.constant 0 : index
    %7 = vector.load %arg3[%c0_6, %c0_7] : memref<8x256xf32, #tpu.memory_space<vmem>>, vector<8x256xf32>
    tpu.vector_store %arg3[%c0_6, %c0_7], %6 {strides = array<i32>} : memref<8x256xf32, #tpu.memory_space<vmem>>, vector<8x256xf32>,
    %8 = vector.extract_strided_slice %5 {offsets = [8, 0], sizes = [8, 256], strides = [1, 1]} : vector<16x256xf32> to vector<8x256xf32>
    %c0_8 = arith.constant 0 : index
    %c0_9 = arith.constant 0 : index
    %9 = vector.load %arg4[%c0_8, %c0_9] : memref<8x256xf32, #tpu.memory_space<vmem>>, vector<8x256xf32>
    tpu.vector_store %arg4[%c0_8, %c0_9], %8 {strides = array<i32>} : memref<8x256xf32, #tpu.memory_space<vmem>>, vector<8x256xf32>,
    return
  }
}

</mosaic_0001>

<bundles_post_ra>
// kernel: _multiple_input_output_impl.1
= control target key start
LH: loop header
LB: loop body
LE: loop exit
PB: predicated region body
PF: predicated region fallthrough
CT: control target
= control target key end

     0   :  { %v128_v0 = vmov 1.0   ;;  %vm22_vm0 = vcmask 195584   ;;  %v129_v7 = vmov 0.0   ;;  %s185_s1 = inlined_call_operand.vmem [shape: f32[8,256], index: 1, kind: input, shape index: {}]   ;;  %s186_s0 = inlined_call_operand.vmem [shape: f32[8,256], index: 0, kind: input, shape index: {}]   ;;  %s187_s2 = inlined_call_operand.vmem [shape: f32[16,24], index: 2, kind: input, shape index: {}]   ;;  %s188_s3 = inlined_call_operand.vmem [shape: f32[8,256], index: 3, kind: output, shape index: {0}]   ;;  %s189_s4 = inlined_call_operand.vmem [shape: f32[8,256], index: 4, kind: output, shape index: {1}]  }
   0x1   :  { %55 = vmatprep.subr.mxu0 %v128_v0  ;;  %120 = vmatprep.subr.mxu1 %v128_v0  ;;  %v19_v1 = vld [vmem:[%s185_s1 + $0x8] sm:$0xff]  ;;  %v18_v2 = vld [vmem:[%s185_s1] sm:$0xff] }
   0x2   :  { %56 = vmatpush1.msra.mxu0 %v128_v0  ;;  %123 = vmatpush1.msra.mxu1 %v128_v0  ;;  %v17_v3 = vld [vmem:[%s186_s0 + $0x8] sm:$0xff]  ;;  %v16_v4 = vld [vmem:[%s186_s0] sm:$0xff] }
   0x3   :  { %57 = vmatprep.subr.mxu0 %v19_v1  ;;  %121 = vmatprep.subr.mxu1 %v19_v1  ;;  %v20_v5 = vld [vmem:[%s187_s2] sm:$0xff]  ;;  %v21_v6 = vld [vmem:[%s187_s2 + $0x8] sm:$0xff] }
   0x4   :  { %58 = vmatpush1.msra.mxu0 %v18_v2  ;;  %124 = vmatpush1.msra.mxu1 %v18_v2 }
   0x5   :  { %59 = vmatprep.subr.mxu0 %v17_v3  ;;  %122 = vmatprep.subr.mxu1 %v17_v3 }
   0x6   :  { %60 = vmatpush1.msra.mxu0 %v16_v4  ;;  %125 = vmatpush1.msra.mxu1 %v16_v4 }
   0x7   :  { %93 = vmatprep.mubr.f32.mxu0 %v129_v7  ;;  %99 = vmatprep.mubr.f32.mxu1 %v129_v7 }
   0x8   :  { %118 = vmatmul.mubr.msk.f32.vlgmr.msra.gmra.mxu0 %vm22_vm0, %v20_v5  ;;  %119 = vmatmul.mubr.msk.f32.vlgmr.msra.gmra.mxu1 %vm22_vm0, %v21_v6 }
  0xc8   :  { %v95_v8 = vpop.f32.mrf.mxu0  ;;  %v101_v9 = vpop.f32.mrf.mxu1 }
  0xc9   :  { %106 = vst [vmem:[%s188_s3] sm:$0xff] %v95_v8  ;;  %108 = vst [vmem:[%s189_s4] sm:$0xff] %v101_v9 }
  0xca   :  { %v97_v10 = vpop.f32.mrf.mxu0  ;;  %v103_v11 = vpop.f32.mrf.mxu1 }
  0xcb   :  { %107 = vst [vmem:[%s188_s3 + $0x8] sm:$0xff] %v97_v10  ;;  %109 = vst [vmem:[%s189_s4 + $0x8] sm:$0xff] %v103_v11 }

</bundles_post_ra>
